<compile_context>
chip_gen: v6e
topology: v6e:2x2x1
jax: 0.10.0
libtpu: 0.0.40
codegen_flags: <defaults>
</compile_context>

<pallas_src>
import jax
import jax.numpy as jnp
from jax.experimental import pallas as pl
from jax.experimental.pallas import tpu as pltpu

_LANE = 128


def _round_up(x, m):
    return ((x + m - 1) // m) * m


def _two_layer_kernel(x_ref, w1_ref, b1_ref, w2_ref, b2_ref, o_ref):
    # h = relu(x @ W1^T + b1): cast x to the compute dtype in-kernel (no
    # wrapper-side copy), MXU matmul with f32 accumulation, f32 bias add.
    x = x_ref[...].astype(w1_ref.dtype)
    h = jnp.dot(x, w1_ref[...], preferred_element_type=jnp.float32)
    h = jnp.maximum(h + b1_ref[...], 0.0)
    # y = h @ W2^T + b2: second MXU pass, f32 accumulation, unpadded D_out.
    y = jnp.dot(h.astype(w2_ref.dtype), w2_ref[...],
                preferred_element_type=jnp.float32)
    o_ref[...] = (y + b2_ref[...]).astype(o_ref.dtype)


def prepare_params(w1, b1, w2, b2, compute_dtype=jnp.bfloat16):
    """One-time parameter prep (NOT in the per-call forward path).

    Transposes the PyTorch nn.Linear weights into row-major matmul layout and
    pads only the hidden dim H up to a multiple of 128 so both MXU operands
    touching the intermediate are lane-dense.  D_in / D_out stay unpadded
    (block == full dim is legal and avoids padded HBM traffic).  Zero padding
    is exact: relu(0 + 0) = 0 and the padded W2 rows are zero.
    """
    H, D_in = w1.shape
    D_out, H2 = w2.shape
    assert H == H2, "w1/w2 hidden dims disagree"
    h_p = _round_up(H, _LANE)

    w1_t = jnp.pad(jnp.transpose(w1).astype(compute_dtype),
                   ((0, 0), (0, h_p - H)))            # (D_in, H_p)
    w2_t = jnp.pad(jnp.transpose(w2).astype(compute_dtype),
                   ((0, h_p - H), (0, 0)))            # (H_p, D_out)
    b1_r = jnp.pad(b1.astype(jnp.float32), (0, h_p - H)).reshape(1, h_p)
    b2_r = b2.astype(jnp.float32).reshape(1, D_out)

    return dict(w1_t=w1_t, b1=b1_r, w2_t=w2_t, b2=b2_r,
                d_in=D_in, h=H, d_out=D_out,
                compute_dtype=jnp.dtype(compute_dtype))


def _vmem_bytes(tm, d_in, h_p, d_out, xbytes, cbytes, obytes):
    act_in = 2 * tm * d_in * xbytes               # double-buffered streamed x tiles
    act_out = 2 * tm * d_out * obytes             # double-buffered streamed out tiles
    wts = (d_in * h_p + h_p * d_out) * cbytes     # resident weights (single-buffered)
    bias = (h_p + d_out) * 4
    inter = (tm * d_in * cbytes                   # in-kernel x cast
             + 2 * tm * h_p * 4                   # h (f32) + slack
             + tm * h_p * cbytes                  # h cast for 2nd matmul
             + tm * d_out * 4)                    # y (f32)
    return act_in + act_out + wts + bias + inter


def _vmem_capacity_bytes():
    try:
        cap = getattr(pltpu.get_tpu_info(), "vmem_capacity_bytes", None)
        if cap:
            return int(cap)
    except Exception:
        pass
    return 64 * 1024 * 1024  # conservative fallback: v7x per-TensorCore VMEM


def _xla_forward(x, params, out_dtype):
    cdtype = params["compute_dtype"]
    h = jnp.dot(x.astype(cdtype), params["w1_t"],
                preferred_element_type=jnp.float32)
    h = jnp.maximum(h + params["b1"], 0.0)
    y = jnp.dot(h.astype(cdtype), params["w2_t"],
                preferred_element_type=jnp.float32)
    return (y + params["b2"]).astype(out_dtype)


def two_layer_net(x, params, *, block_m=512, out_dtype=None, force_pallas=False):
    """Forward pass: x (N, D_in) -> (N, D_out) using prepared params."""
    N, D_in = x.shape
    assert D_in == params["d_in"]
    w1_t, b1_r = params["w1_t"], params["b1"]
    w2_t, b2_r = params["w2_t"], params["b2"]
    h_p = w1_t.shape[1]
    d_out = params["d_out"]
    cdtype = params["compute_dtype"]
    out_dtype = jnp.dtype(out_dtype or x.dtype)

    # Tiny problems: a fused XLA dot chain beats kernel-launch + tiling cost.
    if not force_pallas and N <= 1024 and max(D_in, h_p, d_out) <= 512:
        return _xla_forward(x, params, out_dtype)

    xbytes = jnp.dtype(x.dtype).itemsize
    cbytes = cdtype.itemsize
    obytes = out_dtype.itemsize

    # Sublane granule of the HBM-facing tiles (f32: 8, bf16: 16, int8: 32).
    granule = max(32 // xbytes, 32 // obytes)

    # Batch tile: as large as block_m / N allow (granule-aligned), capped so
    # there are >= 2 tiles ("parallel" can shard over v7x's 2 TensorCores),
    # then shrunk until the working set fits the generation-aware VMEM budget.
    cap = _vmem_capacity_bytes()
    budget = int(0.65 * cap)
    tm = _round_up(max(min(block_m, N), 1), granule)
    if N > granule:
        tm = min(tm, _round_up(pl.cdiv(N, 2), granule))
    while tm > granule and _vmem_bytes(tm, D_in, h_p, d_out,
                                       xbytes, cbytes, obytes) > budget:
        tm = max(granule, (tm // 2) // granule * granule)
    # TODO(synk): for very large H where resident W1/W2 exceed the VMEM budget
    # (esp. v7x 64 MiB/TC), add a trailing "arbitrary" reduction grid axis over
    # H with an f32 VMEM accumulator instead of shrinking tm.

    grid = (pl.cdiv(N, tm),)
    est = _vmem_bytes(tm, D_in, h_p, d_out, xbytes, cbytes, obytes)
    vmem_limit = int(min(cap - (12 << 20), max(32 << 20, est + (8 << 20))))

    cost = pl.CostEstimate(
        flops=2 * N * (D_in * params["h"] + params["h"] * d_out),
        transcendentals=0,
        bytes_accessed=(N * D_in * xbytes + N * d_out * obytes
                        + (D_in * h_p + h_p * d_out) * cbytes
                        + (h_p + d_out) * 4),
    )

    def run(single_buffer_resident):
        res = ({"pipeline_mode": pl.Buffered(1)} if single_buffer_resident else {})
        grid_spec = pltpu.PrefetchScalarGridSpec(
            num_scalar_prefetch=0,
            grid=grid,
            in_specs=[
                pl.BlockSpec((tm, D_in), lambda i: (i, 0)),           # streamed x tile
                pl.BlockSpec((D_in, h_p), lambda i: (0, 0), **res),   # resident W1^T
                pl.BlockSpec((1, h_p), lambda i: (0, 0), **res),      # resident b1
                pl.BlockSpec((h_p, d_out), lambda i: (0, 0), **res),  # resident W2^T
                pl.BlockSpec((1, d_out), lambda i: (0, 0), **res),    # resident b2
            ],
            out_specs=pl.BlockSpec((tm, d_out), lambda i: (i, 0)),    # streamed out tile
        )
        return pl.pallas_call(
            _two_layer_kernel,
            out_shape=jax.ShapeDtypeStruct((N, d_out), out_dtype),
            grid_spec=grid_spec,
            compiler_params=pltpu.CompilerParams(
                dimension_semantics=("parallel",),   # shard batch tiles across TCs
                vmem_limit_bytes=vmem_limit,
            ),
            cost_estimate=cost,
        )(x, w1_t, b1_r, w2_t, b2_r)

    try:
        return run(True)      # single-buffer the never-changing weight blocks
    except Exception:         # pragma: no cover — jax without BlockSpec pipeline_mode
        return run(False)


if __name__ == "__main__":
    # Small shapes consistent with the module: N x D_in -> H -> D_out.
    N, D_in, H, D_out = 40, 32, 64, 16

    key = jax.random.PRNGKey(0)
    kx, kw1, kb1, kw2, kb2 = jax.random.split(key, 5)

    x = jax.random.normal(kx, (N, D_in), dtype=jnp.float32)
    # Deterministic parameter init (shapes match torch.nn.Linear).
    w1 = jax.random.normal(kw1, (H, D_in), dtype=jnp.float32) * 0.1
    b1 = jax.random.normal(kb1, (H,), dtype=jnp.float32) * 0.1
    w2 = jax.random.normal(kw2, (D_out, H), dtype=jnp.float32) * 0.1
    b2 = jax.random.normal(kb2, (D_out,), dtype=jnp.float32) * 0.1

    y_ref = jnp.maximum(x @ w1.T + b1, 0.0) @ w2.T + b2

    # f32 Pallas path with a small block_m -> multi-step batch grid + ragged edge.
    params_f32 = prepare_params(w1, b1, w2, b2, compute_dtype=jnp.float32)
    y_f32 = two_layer_net(x, params_f32, block_m=16, force_pallas=True)
    jax.block_until_ready(y_f32)
    assert y_f32.shape == (N, D_out)
    assert jnp.allclose(y_f32, y_ref, atol=1e-4, rtol=1e-4), "f32 mismatch vs reference"

    # bf16 operands / f32 accumulation — the fast MXU path (default tiling).
    params_bf16 = prepare_params(w1, b1, w2, b2, compute_dtype=jnp.bfloat16)
    y_bf16 = two_layer_net(x, params_bf16, force_pallas=True)
    jax.block_until_ready(y_bf16)
    assert y_bf16.shape == (N, D_out)
    assert jnp.allclose(y_bf16, y_ref, atol=5e-2, rtol=5e-2), "bf16 mismatch vs reference"

    # Default entry point: tiny shapes take the fused-XLA fast path.
    y_fast = two_layer_net(x, params_f32)
    jax.block_until_ready(y_fast)
    assert jnp.allclose(y_fast, y_ref, atol=1e-4, rtol=1e-4), "fast-path mismatch"

    print("KERNEL_OK")
</pallas_src>

<mosaic_0001>
module attributes {stable_mosaic.version = 11 : i64} {
  func.func @_two_layer_kernel(%arg0: i32, %arg1: memref<16x32xf32, #tpu.memory_space<vmem>>, %arg2: memref<32x128xf32, #tpu.memory_space<vmem>>, %arg3: memref<1x128xf32, #tpu.memory_space<vmem>>, %arg4: memref<128x16xf32, #tpu.memory_space<vmem>>, %arg5: memref<1x16xf32, #tpu.memory_space<vmem>>, %arg6: memref<16x16xf32, #tpu.memory_space<vmem>>) attributes {dimension_semantics = [#tpu.dimension_semantics<parallel>], iteration_bounds = array<i64: 3>, scalar_prefetch = 0 : i64, scratch_operands = 0 : i64, tpu.core_type = #tpu.core_type<tc>, window_params = [{transform_indices = @transform_0, window_bounds = array<i64: 16, 32>}, {pipeline_mode = #tpu.pipeline_mode<synchronous>, transform_indices = @transform_1, window_bounds = array<i64: 32, 128>}, {pipeline_mode = #tpu.pipeline_mode<synchronous>, transform_indices = @transform_2, window_bounds = array<i64: 1, 128>}, {pipeline_mode = #tpu.pipeline_mode<synchronous>, transform_indices = @transform_3, window_bounds = array<i64: 128, 16>}, {pipeline_mode = #tpu.pipeline_mode<synchronous>, transform_indices = @transform_4, window_bounds = array<i64: 1, 16>}, {transform_indices = @transform_5, window_bounds = array<i64: 16, 16>}]} {
    %c0 = arith.constant 0 : index
    %c0_0 = arith.constant 0 : index
    %0 = vector.load %arg1[%c0, %c0_0] : memref<16x32xf32, #tpu.memory_space<vmem>>, vector<16x32xf32>
    %c0_1 = arith.constant 0 : index
    %c0_2 = arith.constant 0 : index
    %1 = vector.load %arg2[%c0_1, %c0_2] : memref<32x128xf32, #tpu.memory_space<vmem>>, vector<32x128xf32>
    %cst = arith.constant dense<0.000000e+00> : vector<16x128xf32>
    %2 = tpu.matmul %0, %1, %cst {dimension_numbers = #tpu.dot_dimension_numbers<[1], [0], [0], [1], [0, 0, 1, 1], [], []>} : vector<16x32xf32>, vector<32x128xf32>, vector<16x128xf32> -> vector<16x128xf32>
    %c0_3 = arith.constant 0 : index
    %c0_4 = arith.constant 0 : index
    %3 = vector.load %arg3[%c0_3, %c0_4] : memref<1x128xf32, #tpu.memory_space<vmem>>, vector<1x128xf32>
    %4 = vector.broadcast %3 : vector<1x128xf32> to vector<16x128xf32>
    %5 = arith.addf %2, %4 : vector<16x128xf32>
    %cst_5 = arith.constant 0.000000e+00 : f32
    %6 = vector.broadcast %cst_5 : f32 to vector<16x128xf32>
    %7 = arith.maximumf %5, %6 : vector<16x128xf32>
    %c0_6 = arith.constant 0 : index
    %c0_7 = arith.constant 0 : index
    %8 = vector.load %arg4[%c0_6, %c0_7] : memref<128x16xf32, #tpu.memory_space<vmem>>, vector<128x16xf32>
    %cst_8 = arith.constant dense<0.000000e+00> : vector<16x16xf32>
    %9 = tpu.matmul %7, %8, %cst_8 {dimension_numbers = #tpu.dot_dimension_numbers<[1], [0], [0], [1], [0, 0, 1, 1], [], []>} : vector<16x128xf32>, vector<128x16xf32>, vector<16x16xf32> -> vector<16x16xf32>
    %c0_9 = arith.constant 0 : index
    %c0_10 = arith.constant 0 : index
    %10 = vector.load %arg5[%c0_9, %c0_10] : memref<1x16xf32, #tpu.memory_space<vmem>>, vector<1x16xf32>
    %11 = vector.broadcast %10 : vector<1x16xf32> to vector<16x16xf32>
    %12 = arith.addf %9, %11 : vector<16x16xf32>
    %c0_11 = arith.constant 0 : index
    %c0_12 = arith.constant 0 : index
    %13 = vector.load %arg6[%c0_11, %c0_12] : memref<16x16xf32, #tpu.memory_space<vmem>>, vector<16x16xf32>
    tpu.vector_store %arg6[%c0_11, %c0_12], %12 {strides = array<i32>} : memref<16x16xf32, #tpu.memory_space<vmem>>, vector<16x16xf32>,
    return
  }
  func.func @transform_0(%arg0: i32) -> (i32, i32) {
    %c0_i32 = arith.constant 0 : i32
    %c0_i32_0 = arith.constant 0 : i32
    return %arg0, %c0_i32 : i32, i32
  }
  func.func @transform_1(%arg0: i32) -> (i32, i32) {
    %c0_i32 = arith.constant 0 : i32
    %c0_i32_0 = arith.constant 0 : i32
    %c0_i32_1 = arith.constant 0 : i32
    return %c0_i32, %c0_i32_0 : i32, i32
  }
  func.func @transform_2(%arg0: i32) -> (i32, i32) {
    %c0_i32 = arith.constant 0 : i32
    %c0_i32_0 = arith.constant 0 : i32
    %c0_i32_1 = arith.constant 0 : i32
    return %c0_i32, %c0_i32_0 : i32, i32
  }
  func.func @transform_3(%arg0: i32) -> (i32, i32) {
    %c0_i32 = arith.constant 0 : i32
    %c0_i32_0 = arith.constant 0 : i32
    %c0_i32_1 = arith.constant 0 : i32
    return %c0_i32, %c0_i32_0 : i32, i32
  }
  func.func @transform_4(%arg0: i32) -> (i32, i32) {
    %c0_i32 = arith.constant 0 : i32
    %c0_i32_0 = arith.constant 0 : i32
    %c0_i32_1 = arith.constant 0 : i32
    return %c0_i32, %c0_i32_0 : i32, i32
  }
  func.func @transform_5(%arg0: i32) -> (i32, i32) {
    %c0_i32 = arith.constant 0 : i32
    %c0_i32_0 = arith.constant 0 : i32
    return %arg0, %c0_i32 : i32, i32
  }
}

module attributes {stable_mosaic.version = 11 : i64} {
  func.func @_two_layer_kernel(%arg0: i32, %arg1: memref<16x32xf32, #tpu.memory_space<vmem>>, %arg2: memref<32x128xf32, #tpu.memory_space<vmem>>, %arg3: memref<1x128xf32, #tpu.memory_space<vmem>>, %arg4: memref<128x16xf32, #tpu.memory_space<vmem>>, %arg5: memref<1x16xf32, #tpu.memory_space<vmem>>, %arg6: memref<16x16xf32, #tpu.memory_space<vmem>>) attributes {dimension_semantics = [#tpu.dimension_semantics<parallel>], iteration_bounds = array<i64: 3>, scalar_prefetch = 0 : i64, scratch_operands = 0 : i64, tpu.core_type = #tpu.core_type<tc>, window_params = [{transform_indices = @transform_0, window_bounds = array<i64: 16, 32>}, {pipeline_mode = #tpu.pipeline_mode<synchronous>, transform_indices = @transform_1, window_bounds = array<i64: 32, 128>}, {pipeline_mode = #tpu.pipeline_mode<synchronous>, transform_indices = @transform_2, window_bounds = array<i64: 1, 128>}, {pipeline_mode = #tpu.pipeline_mode<synchronous>, transform_indices = @transform_3, window_bounds = array<i64: 128, 16>}, {pipeline_mode = #tpu.pipeline_mode<synchronous>, transform_indices = @transform_4, window_bounds = array<i64: 1, 16>}, {transform_indices = @transform_5, window_bounds = array<i64: 16, 16>}]} {
    %c0 = arith.constant 0 : index
    %c0_0 = arith.constant 0 : index
    %0 = vector.load %arg1[%c0, %c0_0] : memref<16x32xf32, #tpu.memory_space<vmem>>, vector<16x32xf32>
    %c0_1 = arith.constant 0 : index
    %c0_2 = arith.constant 0 : index
    %1 = vector.load %arg2[%c0_1, %c0_2] : memref<32x128xf32, #tpu.memory_space<vmem>>, vector<32x128xf32>
    %cst = arith.constant dense<0.000000e+00> : vector<16x128xf32>
    %2 = tpu.matmul %0, %1, %cst {dimension_numbers = #tpu.dot_dimension_numbers<[1], [0], [0], [1], [0, 0, 1, 1], [], []>} : vector<16x32xf32>, vector<32x128xf32>, vector<16x128xf32> -> vector<16x128xf32>
    %c0_3 = arith.constant 0 : index
    %c0_4 = arith.constant 0 : index
    %3 = vector.load %arg3[%c0_3, %c0_4] : memref<1x128xf32, #tpu.memory_space<vmem>>, vector<1x128xf32>
    %4 = vector.broadcast %3 : vector<1x128xf32> to vector<16x128xf32>
    %5 = arith.addf %2, %4 : vector<16x128xf32>
    %cst_5 = arith.constant 0.000000e+00 : f32
    %6 = vector.broadcast %cst_5 : f32 to vector<16x128xf32>
    %7 = arith.maximumf %5, %6 : vector<16x128xf32>
    %c0_6 = arith.constant 0 : index
    %c0_7 = arith.constant 0 : index
    %8 = vector.load %arg4[%c0_6, %c0_7] : memref<128x16xf32, #tpu.memory_space<vmem>>, vector<128x16xf32>
    %cst_8 = arith.constant dense<0.000000e+00> : vector<16x16xf32>
    %9 = tpu.matmul %7, %8, %cst_8 {dimension_numbers = #tpu.dot_dimension_numbers<[1], [0], [0], [1], [0, 0, 1, 1], [], []>} : vector<16x128xf32>, vector<128x16xf32>, vector<16x16xf32> -> vector<16x16xf32>
    %c0_9 = arith.constant 0 : index
    %c0_10 = arith.constant 0 : index
    %10 = vector.load %arg5[%c0_9, %c0_10] : memref<1x16xf32, #tpu.memory_space<vmem>>, vector<1x16xf32>
    %11 = vector.broadcast %10 : vector<1x16xf32> to vector<16x16xf32>
    %12 = arith.addf %9, %11 : vector<16x16xf32>
    %c0_11 = arith.constant 0 : index
    %c0_12 = arith.constant 0 : index
    %13 = vector.load %arg6[%c0_11, %c0_12] : memref<16x16xf32, #tpu.memory_space<vmem>>, vector<16x16xf32>
    tpu.vector_store %arg6[%c0_11, %c0_12], %12 {strides = array<i32>} : memref<16x16xf32, #tpu.memory_space<vmem>>, vector<16x16xf32>,
    return
  }
  func.func @transform_0(%arg0: i32) -> (i32, i32) {
    %c0_i32 = arith.constant 0 : i32
    %c0_i32_0 = arith.constant 0 : i32
    return %arg0, %c0_i32 : i32, i32
  }
  func.func @transform_1(%arg0: i32) -> (i32, i32) {
    %c0_i32 = arith.constant 0 : i32
    %c0_i32_0 = arith.constant 0 : i32
    %c0_i32_1 = arith.constant 0 : i32
    return %c0_i32, %c0_i32_0 : i32, i32
  }
  func.func @transform_2(%arg0: i32) -> (i32, i32) {
    %c0_i32 = arith.constant 0 : i32
    %c0_i32_0 = arith.constant 0 : i32
    %c0_i32_1 = arith.constant 0 : i32
    return %c0_i32, %c0_i32_0 : i32, i32
  }
  func.func @transform_3(%arg0: i32) -> (i32, i32) {
    %c0_i32 = arith.constant 0 : i32
    %c0_i32_0 = arith.constant 0 : i32
    %c0_i32_1 = arith.constant 0 : i32
    return %c0_i32, %c0_i32_0 : i32, i32
  }
  func.func @transform_4(%arg0: i32) -> (i32, i32) {
    %c0_i32 = arith.constant 0 : i32
    %c0_i32_0 = arith.constant 0 : i32
    %c0_i32_1 = arith.constant 0 : i32
    return %c0_i32, %c0_i32_0 : i32, i32
  }
  func.func @transform_5(%arg0: i32) -> (i32, i32) {
    %c0_i32 = arith.constant 0 : i32
    %c0_i32_0 = arith.constant 0 : i32
    return %arg0, %c0_i32 : i32, i32
  }
}

</mosaic_0001>

<bundles_post_ra>
// kernel: tpu_custom_call.1
= control target key start
LH: loop header
LB: loop body
LE: loop exit
PB: predicated region body
PF: predicated region fallthrough
CT: control target
= control target key end

     0   :  { %s971_s18 = smov 0   ;;  %s973_s19 = smov 0   ;;  %s1120_s0 = inlined_call_operand.vmem [shape: f32[40,32], index: 0, kind: input, shape index: {}]   ;;  %s1121_s1 = inlined_call_operand.vmem [shape: f32[32,128], index: 1, kind: input, shape index: {}]   ;;  %s1122_s2 = inlined_call_operand.vmem [shape: f32[1,128], index: 2, kind: input, shape index: {}]   ;;  %s1123_s3 = inlined_call_operand.vmem [shape: f32[128,16], index: 3, kind: input, shape index: {}]   ;;  %s1124_s4 = inlined_call_operand.vmem [shape: f32[1,16], index: 4, kind: input, shape index: {}]   ;;  %s1125_s5 = inlined_call_operand.vmem [shape: f32[40,16], index: 5, kind: output, shape index: {}]  }
   0x1   :  { %s975_s20 = smov 0  }
   0x2 LB: > { %s984_s21 = sadd.s32 4294967295, %s907_s20   ;;  %s986_s22 = sadd.s32 1, %s907_s20   ;;  %s907_s20 = sphi %s975_s20, %s1129_s20   ;;  %s903_s19 = sphi %s973_s19, %s1128_s19   ;;  %s899_s18 = sphi %s971_s18, %s1127_s18  }
   0x3   : > { %s129_s23 = ssub.s32 %s907_s20, %s986_s22  ;;  %s132_s24 = sadd.s32 1, %s903_s19 }
   0x4   : > { %p130_p0 = scmp.eq.s32.totalorder %s129_s23, 0  ;;  %p142_p1 = scmp.ne.s32.totalorder %s903_s19, %s899_s18 }
   0x5   : > { %p143_p2 = scmp.eq.s32.totalorder %s984_s21, 2  ;;  %p667_p3 = scmp.ge.s32.totalorder %s907_s20, 1 }
   0x6   : > { %s994_s25 = scalar_select %p130_p0, %s903_s19, %s132_s24  }
   0x7   : > { %p996_p4 = por %p143_p2, %p142_p1  ;;  %p196_p5 = scmp.lt.s32.totalorder %s907_s20, 4 }
   0x9   : > { %p197_p6 = pnand %p667_p3, %p196_p5 }
   0xa   : > { %s1007_s6 = sshll.u32 (!%p197_p6), %s984_s21, 1  ;;  %s224_s14 = sand.u32 (!%p197_p6), 1, %s899_s18  }
   0xb   : > { %200 = sbr.rel (%p197_p6) target bundleno = 462 (0x1ce), region = 40  ;;  %p232_p7 = scmp.lt.s32.totalorder (!%p197_p6), %s1007_s6, 4 }
   0xc   : > { %s668_s15 = sshll.u32 (!%p197_p6), %s224_s14, 4 }
  0x10   : > { %v251_v0 = vld [vmem:[%s1121_s1 + $0x18] sm:$0xff]  ;;  %v250_v1 = vld [vmem:[%s1121_s1 + $0x10] sm:$0xff]  ;;  %v249_v4 = vld [vmem:[%s1121_s1 + $0x8] sm:$0xff]  ;;  %s233_s13 = scalar_select %p232_p7, %s1007_s6, 4  ;;  %vm259_vm0 = vcmask 261120   ;;  %vm441_vm1 = vcmask 130048  }
  0x11   : > { %719 = vmatprep.subr.mxu0 %v251_v0  ;;  %v358_v2 = vld [vmem:[%s1123_s3 + $0x78] sm:$0xff]  ;;  %v357_v3 = vld [vmem:[%s1123_s3 + $0x70] sm:$0xff]  ;;  %v356_v5 = vld [vmem:[%s1123_s3 + $0x68] sm:$0xff]  ;;  %s452_s18 = ssub.s32 (%p996_p4), 5, %s1007_s6  ;;  %s692_s23 = sshll.u32 (%p996_p4), %s984_s21, 4 }
  0x12   : > { %720 = vmatpush3.msra.mxu0 %v251_v0  ;;  %730 = vmatprep.subr.mxu1 %v358_v2  ;;  %v248_v6 = vld [vmem:[%s1121_s1] sm:$0xff]  ;;  %s670_s20 = sshll.u32 %s233_s13, 3  ;;  %v354_v10 = vld [vmem:[%s1123_s3 + $0x58] sm:$0xff]  ;;  %v353_v11 = vld [vmem:[%s1123_s3 + $0x50] sm:$0xff]  ;;  %p453_p8 = scmp.lt.s32.totalorder (%p996_p4), %s452_s18, 2 }
  0x13   : > { %721 = vmatprep.subr.mxu0 %v250_v1  ;;  %731 = vmatpush3.msra.mxu1 %v358_v2  ;;  %s235_s27 = scalar_lea.vmem %s1120_s0, %s670_s20  ;;  %v355_v7 = vld [vmem:[%s1123_s3 + $0x60] sm:$0xff]  ;;  %v352_v12 = vld [vmem:[%s1123_s3 + $0x48] sm:$0xff]  ;;  %v350_v14 = vld [vmem:[%s1123_s3 + $0x38] sm:$0xff]  ;;  %s1075_s20 = scalar_lea.vmem [#allocation2], %s668_s15  }
  0x14   : > { %722 = vmatpush3.msra.mxu0 %v250_v1  ;;  %732 = vmatprep.subr.mxu1 %v357_v3  ;;  %v246_v8 = vld [vmem:[%s235_s27] sm:$0xff]  ;;  %v247_v9 = vld [vmem:[%s235_s27 + $0x8] sm:$0xff]  ;;  %v349_v15 = vld [vmem:[%s1123_s3 + $0x30] sm:$0xff]  ;;  %s1086_s28 = scalar_lea.vmem (%p996_p4), %s1125_s5, %s692_s23  }
  0x15   : > { %723 = vmatprep.subr.mxu0 %v249_v4  ;;  %733 = vmatpush3.msra.mxu1 %v357_v3  ;;  %v351_v13 = vld [vmem:[%s1123_s3 + $0x40] sm:$0xff]  ;;  %v348_v16 = vld [vmem:[%s1123_s3 + $0x28] sm:$0xff]  ;;  %v346_v18 = vld [vmem:[%s1123_s3 + $0x18] sm:$0xff] }
  0x16   : > { %724 = vmatpush3.msra.mxu0 %v249_v4  ;;  %734 = vmatprep.subr.mxu1 %v356_v5  ;;  %v347_v17 = vld [vmem:[%s1123_s3 + $0x20] sm:$0xff]  ;;  %v345_v19 = vld [vmem:[%s1123_s3 + $0x10] sm:$0xff]  ;;  %v344_v20 = vld [vmem:[%s1123_s3 + $0x8] sm:$0xff] }
  0x17   : > { %725 = vmatprep.subr.mxu0 %v248_v6  ;;  %735 = vmatpush3.msra.mxu1 %v356_v5  ;;  %v343_v21 = vld [vmem:[%s1123_s3] sm:$0xff] }
  0x18   : > { %726 = vmatpush3.msra.mxu0 %v248_v6  ;;  %727 = vmatprep.mubr.msk.f32.mxu0 %vm259_vm0, %v246_v8  ;;  %v671_v22 = vld [vmem:[%s1122_s2] ss:$0 sm:$0xff] }
  0x19   : > { %728 = vmatmul.mubr.msk.f32.vlgmr.msra.gmra.mxu0 %vm259_vm0, %v247_v9  ;;  %736 = vmatprep.subr.mxu1 %v355_v7  ;;  %v674_v29 = vld [vmem:[%s1124_s4] ss:$0 sm:$0xff] }
  0x1a   : > { %737 = vmatpush3.msra.mxu1 %v355_v7 }
  0x1b   : > { %738 = vmatprep.subr.mxu1 %v354_v10 }
  0x1c   : > { %739 = vmatpush3.msra.mxu1 %v354_v10 }
  0x1d   : > { %740 = vmatprep.subr.mxu1 %v353_v11 }
  0x1e   : > { %741 = vmatpush3.msra.mxu1 %v353_v11 }
  0x1f   : > { %742 = vmatprep.subr.mxu1 %v352_v12 }
  0x20   : > { %743 = vmatpush3.msra.mxu1 %v352_v12 }
  0x21   : > { %744 = vmatprep.subr.mxu1 %v351_v13 }
  0x22   : > { %745 = vmatpush3.msra.mxu1 %v351_v13 }
  0x23   : > { %746 = vmatprep.subr.mxu1 %v350_v14 }
  0x24   : > { %747 = vmatpush3.msra.mxu1 %v350_v14 }
  0x25   : > { %748 = vmatprep.subr.mxu1 %v349_v15 }
  0x26   : > { %749 = vmatpush3.msra.mxu1 %v349_v15 }
  0x27   : > { %750 = vmatprep.subr.mxu1 %v348_v16 }
  0x28   : > { %751 = vmatpush3.msra.mxu1 %v348_v16 }
  0x29   : > { %752 = vmatprep.subr.mxu1 %v347_v17 }
  0x2a   : > { %753 = vmatpush3.msra.mxu1 %v347_v17 }
  0x2b   : > { %754 = vmatprep.subr.mxu1 %v346_v18 }
  0x2c   : > { %755 = vmatpush3.msra.mxu1 %v346_v18 }
  0x2d   : > { %756 = vmatprep.subr.mxu1 %v345_v19 }
  0x2e   : > { %757 = vmatpush3.msra.mxu1 %v345_v19 }
  0x2f   : > { %758 = vmatprep.subr.mxu1 %v344_v20 }
  0x30   : > { %759 = vmatpush3.msra.mxu1 %v344_v20 }
  0x31   : > { %760 = vmatprep.subr.mxu1 %v343_v21 }
  0x32   : > { %761 = vmatpush3.msra.mxu1 %v343_v21 }
  0xd9   : > { %v729_v23 = vpop.f32.mrf.mxu0 }
  0xda   : > { %v338_v24 = vadd.f32 %v729_v23, %v671_v22 }
  0xdb   : > { %v332_v25 = vpop.f32.mrf.mxu0 }
  0xdc   : > { %v333_v26 = vadd.f32 %v671_v22, %v332_v25  ;;  %v342_v28 = vmax.f32 %v338_v24, 0.0 }
  0xde   : > { %v341_v27 = vmax.f32 %v333_v26, 0.0 }
  0xe0   : > { %762 = vmatprep.mubr.f32.mxu1 %v341_v27 }
  0xe1   : > { %763 = vmatmul.mubr.f32.vlgmr.msra.gmra.mxu1 %v342_v28 }
 0x1a1   : > { %v764_v30 = vpop.f32.mrf.mxu1 }
 0x1a2   : > { %v438_v31 = vadd.f32 %v764_v30, %v674_v29  ;;  %450 = sbr.rel (!%p996_p4) target bundleno = 462 (0x1ce), region = 44 }
 0x1a3   : > { %v432_v32 = vpop.f32.mrf.mxu1 }
 0x1a4   : > { %443 = vst.msk [vmem:[%s1075_s20 + $0x8] sm:$0xff] %vm441_vm1, %v438_v31  ;;  %v433_v33 = vadd.f32 %v674_v29, %v432_v32 }
 0x1a6   : > { %442 = vst.msk [vmem:[%s1075_s20] sm:$0xff] %vm441_vm1, %v433_v33 }
 0x1a7   : > { %s1131_s18 = smov (!%p453_p8, %s452_s18), 2 }
 0x1a8   : > { %s677_s29 = sshll.u32 %s1131_s18, 7 }
 0x1a9   : > { %p680_p9 = scmp.eq.s32.totalorder %s677_s29, 0 }
 0x1aa   : > { %s1092_s30 = sshrl.u32 (!%p680_p9), %s1131_s18, 1 }
 0x1ab   : > { %461 = sbr.rel (%p680_p9) target bundleno = 462 (0x1ce), region = 48  ;;  %p681_p10 = scmp.le.s32.totalorder (!%p680_p9), %s1092_s30, 0 }
 0x1b0   : > { %620 = sbr.rel (%p681_p10) target bundleno = 445 (0x1bd), region = 124  ;;  %s909_s21 = smov (!%p681_p10), %s1086_s28  }
 0x1b1   : > { %s913_s26 = smov (!%p681_p10), %s1075_s20   ;;  %s917_s6 = smov (!%p681_p10), 0  }
 0x1b2   : > { %s921_s7 = smov (!%p681_p10), 0  }
 0x1b5 LB: >> { %v526_v34 = vld [vmem:[%s915_s26] sm:$0xff]  ;;  %v528_v35 = vld [vmem:[%s915_s26 + $0x8] sm:$0xff]  ;;  %s530_s8 = sadd.s32 1, %s919_s6  ;;  %s520_s7 = sadd.s32 1, %s923_s7   ;;  %s923_s7 = sphi %s921_s7, %s520_s7   ;;  %s919_s6 = sphi %s917_s6, %s918_s6   ;;  %s915_s26 = sphi %s913_s26, %s535_s26   ;;  %s911_s21 = sphi %s909_s21, %s536_s21  }
 0x1b6   : >> { %527 = vst [vmem:[%s911_s21] sm:$0xff] %v526_v34  ;;  %529 = vst [vmem:[%s911_s21 + $0x8] sm:$0xff] %v528_v35  ;;  %p531_p11 = scmp.ge.s32.totalorder %s530_s8, %s1092_s30  ;;  %p519_p12 = scmp.ge.s32.totalorder %s520_s7, %s1092_s30 }
 0x1b8   : >> { %s1133_s8 = smov (%p531_p11, %s530_s8), 0  ;;  %522 = sbr.rel (!%p519_p12) target bundleno = 437 (0x1b5), region = 130 }
 0x1b9   : >> { %s682_s9 = sshll.u32 %s1133_s8, 4  ;;  %s918_s6 = smov %s1133_s8  }
 0x1ba   : >> { %s535_s26 = scalar_lea.vmem %s1075_s20, %s682_s9 [#allocation2]   ;;  %s536_s21 = scalar_lea.vmem %s1086_s28, %s682_s9  }
 0x1bd PF: > { %s1102_s10 = sand.u32 1, %s1131_s18   ;;  %s693_s11 = sshll.u32 %s1092_s30, 4 }
 0x1be   : > { %s541_s12 = scalar_lea.vmem %s1075_s20, %s693_s11 [#allocation2]   ;;  %s543_s13 = scalar_lea.vmem %s1086_s28, %s693_s11  }
 0x1bf   : > { %p687_p13 = scmp.le.s32.totalorder %s1102_s10, 0 }
 0x1c0   : > { %s925_s14 = smov (!%p687_p13), %s543_s13   ;;  %s929_s15 = smov (!%p687_p13), %s541_s12  }
 0x1c1   : > { %634 = sbr.rel (%p687_p13) target bundleno = 462 (0x1ce), region = 135  ;;  %s933_s16 = smov (!%p687_p13), 0  }
 0x1c2   : > { %s937_s17 = smov (!%p687_p13), 0  }
 0x1c6 LB: >> { %v553_v36 = vld [vmem:[%s931_s15] sm:$0xff]  ;;  %s555_s18 = sadd.s32 1, %s935_s16  ;;  %s547_s17 = sadd.s32 1, %s939_s17   ;;  %s939_s17 = sphi %s937_s17, %s547_s17   ;;  %s935_s16 = sphi %s933_s16, %s934_s16   ;;  %s931_s15 = sphi %s929_s15, %s560_s15   ;;  %s927_s14 = sphi %s925_s14, %s561_s14  }
 0x1c7   : >> { %554 = vst [vmem:[%s927_s14] sm:$0xff] %v553_v36  ;;  %p556_p0 = scmp.ge.s32.totalorder %s555_s18, %s1102_s10  ;;  %p546_p1 = scmp.ge.s32.totalorder %s547_s17, %s1102_s10 }
 0x1c9   : >> { %s1135_s18 = smov (%p556_p0, %s555_s18), 0  ;;  %549 = sbr.rel (!%p546_p1) target bundleno = 454 (0x1c6), region = 141 }
 0x1ca   : >> { %s688_s20 = sshll.u32 %s1135_s18, 3  ;;  %s934_s16 = smov %s1135_s18  }
 0x1cb   : >> { %s560_s15 = scalar_lea.vmem %s541_s12, %s688_s20 [#allocation2]   ;;  %s561_s14 = scalar_lea.vmem %s543_s13, %s688_s20  }
 0x1ce PF: > { %p12_p2 = scmp.ge.s32.totalorder %s986_s22, 5   ;;  %s1127_s18 = smov %s903_s19 }
 0x1cf   : > { %s1128_s19 = smov %s994_s25  ;;  %s1129_s20 = smov %s986_s22 }
 0x1d0   :  { %14 = sbr.rel (!%p12_p2) target bundleno = 2 (0x2), region = 152 }

// kernel: tpu_custom_call.1
= control target key start
LH: loop header
LB: loop body
LE: loop exit
PB: predicated region body
PF: predicated region fallthrough
CT: control target
= control target key end

     0   :  { %s971_s18 = smov 0   ;;  %s973_s19 = smov 0   ;;  %s1120_s0 = inlined_call_operand.vmem [shape: f32[40,32], index: 0, kind: input, shape index: {}]   ;;  %s1121_s1 = inlined_call_operand.vmem [shape: f32[32,128], index: 1, kind: input, shape index: {}]   ;;  %s1122_s2 = inlined_call_operand.vmem [shape: f32[1,128], index: 2, kind: input, shape index: {}]   ;;  %s1123_s3 = inlined_call_operand.vmem [shape: f32[128,16], index: 3, kind: input, shape index: {}]   ;;  %s1124_s4 = inlined_call_operand.vmem [shape: f32[1,16], index: 4, kind: input, shape index: {}]   ;;  %s1125_s5 = inlined_call_operand.vmem [shape: f32[40,16], index: 5, kind: output, shape index: {}]  }
   0x1   :  { %s975_s20 = smov 0  }
   0x2 LB: > { %s984_s21 = sadd.s32 4294967295, %s907_s20   ;;  %s986_s22 = sadd.s32 1, %s907_s20   ;;  %s907_s20 = sphi %s975_s20, %s1129_s20   ;;  %s903_s19 = sphi %s973_s19, %s1128_s19   ;;  %s899_s18 = sphi %s971_s18, %s1127_s18  }
   0x3   : > { %s129_s23 = ssub.s32 %s907_s20, %s986_s22  ;;  %s132_s24 = sadd.s32 1, %s903_s19 }
   0x4   : > { %p130_p0 = scmp.eq.s32.totalorder %s129_s23, 0  ;;  %p142_p1 = scmp.ne.s32.totalorder %s903_s19, %s899_s18 }
   0x5   : > { %p143_p2 = scmp.eq.s32.totalorder %s984_s21, 2  ;;  %p667_p3 = scmp.ge.s32.totalorder %s907_s20, 1 }
   0x6   : > { %s994_s25 = scalar_select %p130_p0, %s903_s19, %s132_s24  }
   0x7   : > { %p996_p4 = por %p143_p2, %p142_p1  ;;  %p196_p5 = scmp.lt.s32.totalorder %s907_s20, 4 }
   0x9   : > { %p197_p6 = pnand %p667_p3, %p196_p5 }
   0xa   : > { %s1007_s6 = sshll.u32 (!%p197_p6), %s984_s21, 1  ;;  %s224_s14 = sand.u32 (!%p197_p6), 1, %s899_s18  }
   0xb   : > { %200 = sbr.rel (%p197_p6) target bundleno = 462 (0x1ce), region = 40  ;;  %p232_p7 = scmp.lt.s32.totalorder (!%p197_p6), %s1007_s6, 4 }
   0xc   : > { %s668_s15 = sshll.u32 (!%p197_p6), %s224_s14, 4 }
  0x10   : > { %v251_v0 = vld [vmem:[%s1121_s1 + $0x18] sm:$0xff]  ;;  %v250_v1 = vld [vmem:[%s1121_s1 + $0x10] sm:$0xff]  ;;  %v249_v4 = vld [vmem:[%s1121_s1 + $0x8] sm:$0xff]  ;;  %s233_s13 = scalar_select %p232_p7, %s1007_s6, 4  ;;  %vm259_vm0 = vcmask 261120   ;;  %vm441_vm1 = vcmask 130048  }
  0x11   : > { %719 = vmatprep.subr.mxu0 %v251_v0  ;;  %v358_v2 = vld [vmem:[%s1123_s3 + $0x78] sm:$0xff]  ;;  %v357_v3 = vld [vmem:[%s1123_s3 + $0x70] sm:$0xff]  ;;  %v356_v5 = vld [vmem:[%s1123_s3 + $0x68] sm:$0xff]  ;;  %s452_s18 = ssub.s32 (%p996_p4), 5, %s1007_s6  ;;  %s692_s23 = sshll.u32 (%p996_p4), %s984_s21, 4 }
  0x12   : > { %720 = vmatpush3.msra.mxu0 %v251_v0  ;;  %730 = vmatprep.subr.mxu1 %v358_v2  ;;  %v248_v6 = vld [vmem:[%s1121_s1] sm:$0xff]  ;;  %s670_s20 = sshll.u32 %s233_s13, 3  ;;  %v354_v10 = vld [vmem:[%s1123_s3 + $0x58] sm:$0xff]  ;;  %v353_v11 = vld [vmem:[%s1123_s3 + $0x50] sm:$0xff]  ;;  %p453_p8 = scmp.lt.s32.totalorder (%p996_p4), %s452_s18, 2 }
  0x13   : > { %721 = vmatprep.subr.mxu0 %v250_v1  ;;  %731 = vmatpush3.msra.mxu1 %v358_v2  ;;  %s235_s27 = scalar_lea.vmem %s1120_s0, %s670_s20  ;;  %v355_v7 = vld [vmem:[%s1123_s3 + $0x60] sm:$0xff]  ;;  %v352_v12 = vld [vmem:[%s1123_s3 + $0x48] sm:$0xff]  ;;  %v350_v14 = vld [vmem:[%s1123_s3 + $0x38] sm:$0xff]  ;;  %s1075_s20 = scalar_lea.vmem [#allocation2], %s668_s15  }
  0x14   : > { %722 = vmatpush3.msra.mxu0 %v250_v1  ;;  %732 = vmatprep.subr.mxu1 %v357_v3  ;;  %v246_v8 = vld [vmem:[%s235_s27] sm:$0xff]  ;;  %v247_v9 = vld [vmem:[%s235_s27 + $0x8] sm:$0xff]  ;;  %v349_v15 = vld [vmem:[%s1123_s3 + $0x30] sm:$0xff]  ;;  %s1086_s28 = scalar_lea.vmem (%p996_p4), %s1125_s5, %s692_s23  }
  0x15   : > { %723 = vmatprep.subr.mxu0 %v249_v4  ;;  %733 = vmatpush3.msra.mxu1 %v357_v3  ;;  %v351_v13 = vld [vmem:[%s1123_s3 + $0x40] sm:$0xff]  ;;  %v348_v16 = vld [vmem:[%s1123_s3 + $0x28] sm:$0xff]  ;;  %v346_v18 = vld [vmem:[%s1123_s3 + $0x18] sm:$0xff] }
  0x16   : > { %724 = vmatpush3.msra.mxu0 %v249_v4  ;;  %734 = vmatprep.subr.mxu1 %v356_v5  ;;  %v347_v17 = vld [vmem:[%s1123_s3 + $0x20] sm:$0xff]  ;;  %v345_v19 = vld [vmem:[%s1123_s3 + $0x10] sm:$0xff]  ;;  %v344_v20 = vld [vmem:[%s1123_s3 + $0x8] sm:$0xff] }
  0x17   : > { %725 = vmatprep.subr.mxu0 %v248_v6  ;;  %735 = vmatpush3.msra.mxu1 %v356_v5  ;;  %v343_v21 = vld [vmem:[%s1123_s3] sm:$0xff] }
  0x18   : > { %726 = vmatpush3.msra.mxu0 %v248_v6  ;;  %727 = vmatprep.mubr.msk.f32.mxu0 %vm259_vm0, %v246_v8  ;;  %v671_v22 = vld [vmem:[%s1122_s2] ss:$0 sm:$0xff] }
  0x19   : > { %728 = vmatmul.mubr.msk.f32.vlgmr.msra.gmra.mxu0 %vm259_vm0, %v247_v9  ;;  %736 = vmatprep.subr.mxu1 %v355_v7  ;;  %v674_v29 = vld [vmem:[%s1124_s4] ss:$0 sm:$0xff] }
  0x1a   : > { %737 = vmatpush3.msra.mxu1 %v355_v7 }
  0x1b   : > { %738 = vmatprep.subr.mxu1 %v354_v10 }
  0x1c   : > { %739 = vmatpush3.msra.mxu1 %v354_v10 }
  0x1d   : > { %740 = vmatprep.subr.mxu1 %v353_v11 }
  0x1e   : > { %741 = vmatpush3.msra.mxu1 %v353_v11 }
  0x1f   : > { %742 = vmatprep.subr.mxu1 %v352_v12 }
  0x20   : > { %743 = vmatpush3.msra.mxu1 %v352_v12 }
  0x21   : > { %744 = vmatprep.subr.mxu1 %v351_v13 }
  0x22   : > { %745 = vmatpush3.msra.mxu1 %v351_v13 }
  0x23   : > { %746 = vmatprep.subr.mxu1 %v350_v14 }
  0x24   : > { %747 = vmatpush3.msra.mxu1 %v350_v14 }
  0x25   : > { %748 = vmatprep.subr.mxu1 %v349_v15 }
  0x26   : > { %749 = vmatpush3.msra.mxu1 %v349_v15 }
  0x27   : > { %750 = vmatprep.subr.mxu1 %v348_v16 }
  0x28   : > { %751 = vmatpush3.msra.mxu1 %v348_v16 }
  0x29   : > { %752 = vmatprep.subr.mxu1 %v347_v17 }
  0x2a   : > { %753 = vmatpush3.msra.mxu1 %v347_v17 }
  0x2b   : > { %754 = vmatprep.subr.mxu1 %v346_v18 }
  0x2c   : > { %755 = vmatpush3.msra.mxu1 %v346_v18 }
  0x2d   : > { %756 = vmatprep.subr.mxu1 %v345_v19 }
  0x2e   : > { %757 = vmatpush3.msra.mxu1 %v345_v19 }
  0x2f   : > { %758 = vmatprep.subr.mxu1 %v344_v20 }
  0x30   : > { %759 = vmatpush3.msra.mxu1 %v344_v20 }
  0x31   : > { %760 = vmatprep.subr.mxu1 %v343_v21 }
  0x32   : > { %761 = vmatpush3.msra.mxu1 %v343_v21 }
  0xd9   : > { %v729_v23 = vpop.f32.mrf.mxu0 }
  0xda   : > { %v338_v24 = vadd.f32 %v729_v23, %v671_v22 }
  0xdb   : > { %v332_v25 = vpop.f32.mrf.mxu0 }
  0xdc   : > { %v333_v26 = vadd.f32 %v671_v22, %v332_v25  ;;  %v342_v28 = vmax.f32 %v338_v24, 0.0 }
  0xde   : > { %v341_v27 = vmax.f32 %v333_v26, 0.0 }
  0xe0   : > { %762 = vmatprep.mubr.f32.mxu1 %v341_v27 }
  0xe1   : > { %763 = vmatmul.mubr.f32.vlgmr.msra.gmra.mxu1 %v342_v28 }
 0x1a1   : > { %v764_v30 = vpop.f32.mrf.mxu1 }
 0x1a2   : > { %v438_v31 = vadd.f32 %v764_v30, %v674_v29  ;;  %450 = sbr.rel (!%p996_p4) target bundleno = 462 (0x1ce), region = 44 }
 0x1a3   : > { %v432_v32 = vpop.f32.mrf.mxu1 }
 0x1a4   : > { %443 = vst.msk [vmem:[%s1075_s20 + $0x8] sm:$0xff] %vm441_vm1, %v438_v31  ;;  %v433_v33 = vadd.f32 %v674_v29, %v432_v32 }
 0x1a6   : > { %442 = vst.msk [vmem:[%s1075_s20] sm:$0xff] %vm441_vm1, %v433_v33 }
 0x1a7   : > { %s1131_s18 = smov (!%p453_p8, %s452_s18), 2 }
 0x1a8   : > { %s677_s29 = sshll.u32 %s1131_s18, 7 }
 0x1a9   : > { %p680_p9 = scmp.eq.s32.totalorder %s677_s29, 0 }
 0x1aa   : > { %s1092_s30 = sshrl.u32 (!%p680_p9), %s1131_s18, 1 }
 0x1ab   : > { %461 = sbr.rel (%p680_p9) target bundleno = 462 (0x1ce), region = 48  ;;  %p681_p10 = scmp.le.s32.totalorder (!%p680_p9), %s1092_s30, 0 }
 0x1b0   : > { %620 = sbr.rel (%p681_p10) target bundleno = 445 (0x1bd), region = 124  ;;  %s909_s21 = smov (!%p681_p10), %s1086_s28  }
 0x1b1   : > { %s913_s26 = smov (!%p681_p10), %s1075_s20   ;;  %s917_s6 = smov (!%p681_p10), 0  }
 0x1b2   : > { %s921_s7 = smov (!%p681_p10), 0  }
 0x1b5 LB: >> { %v526_v34 = vld [vmem:[%s915_s26] sm:$0xff]  ;;  %v528_v35 = vld [vmem:[%s915_s26 + $0x8] sm:$0xff]  ;;  %s530_s8 = sadd.s32 1, %s919_s6  ;;  %s520_s7 = sadd.s32 1, %s923_s7   ;;  %s923_s7 = sphi %s921_s7, %s520_s7   ;;  %s919_s6 = sphi %s917_s6, %s918_s6   ;;  %s915_s26 = sphi %s913_s26, %s535_s26   ;;  %s911_s21 = sphi %s909_s21, %s536_s21  }
 0x1b6   : >> { %527 = vst [vmem:[%s911_s21] sm:$0xff] %v526_v34  ;;  %529 = vst [vmem:[%s911_s21 + $0x8] sm:$0xff] %v528_v35  ;;  %p531_p11 = scmp.ge.s32.totalorder %s530_s8, %s1092_s30  ;;  %p519_p12 = scmp.ge.s32.totalorder %s520_s7, %s1092_s30 }
 0x1b8   : >> { %s1133_s8 = smov (%p531_p11, %s530_s8), 0  ;;  %522 = sbr.rel (!%p519_p12) target bundleno = 437 (0x1b5), region = 130 }
 0x1b9   : >> { %s682_s9 = sshll.u32 %s1133_s8, 4  ;;  %s918_s6 = smov %s1133_s8  }
 0x1ba   : >> { %s535_s26 = scalar_lea.vmem %s1075_s20, %s682_s9 [#allocation2]   ;;  %s536_s21 = scalar_lea.vmem %s1086_s28, %s682_s9  }
 0x1bd PF: > { %s1102_s10 = sand.u32 1, %s1131_s18   ;;  %s693_s11 = sshll.u32 %s1092_s30, 4 }
 0x1be   : > { %s541_s12 = scalar_lea.vmem %s1075_s20, %s693_s11 [#allocation2]   ;;  %s543_s13 = scalar_lea.vmem %s1086_s28, %s693_s11  }
 0x1bf   : > { %p687_p13 = scmp.le.s32.totalorder %s1102_s10, 0 }
 0x1c0   : > { %s925_s14 = smov (!%p687_p13), %s543_s13   ;;  %s929_s15 = smov (!%p687_p13), %s541_s12  }
 0x1c1   : > { %634 = sbr.rel (%p687_p13) target bundleno = 462 (0x1ce), region = 135  ;;  %s933_s16 = smov (!%p687_p13), 0  }
 0x1c2   : > { %s937_s17 = smov (!%p687_p13), 0  }
 0x1c6 LB: >> { %v553_v36 = vld [vmem:[%s931_s15] sm:$0xff]  ;;  %s555_s18 = sadd.s32 1, %s935_s16  ;;  %s547_s17 = sadd.s32 1, %s939_s17   ;;  %s939_s17 = sphi %s937_s17, %s547_s17   ;;  %s935_s16 = sphi %s933_s16, %s934_s16   ;;  %s931_s15 = sphi %s929_s15, %s560_s15   ;;  %s927_s14 = sphi %s925_s14, %s561_s14  }
 0x1c7   : >> { %554 = vst [vmem:[%s927_s14] sm:$0xff] %v553_v36  ;;  %p556_p0 = scmp.ge.s32.totalorder %s555_s18, %s1102_s10  ;;  %p546_p1 = scmp.ge.s32.totalorder %s547_s17, %s1102_s10 }
 0x1c9   : >> { %s1135_s18 = smov (%p556_p0, %s555_s18), 0  ;;  %549 = sbr.rel (!%p546_p1) target bundleno = 454 (0x1c6), region = 141 }
 0x1ca   : >> { %s688_s20 = sshll.u32 %s1135_s18, 3  ;;  %s934_s16 = smov %s1135_s18  }
 0x1cb   : >> { %s560_s15 = scalar_lea.vmem %s541_s12, %s688_s20 [#allocation2]   ;;  %s561_s14 = scalar_lea.vmem %s543_s13, %s688_s20  }
 0x1ce PF: > { %p12_p2 = scmp.ge.s32.totalorder %s986_s22, 5   ;;  %s1127_s18 = smov %s903_s19 }
 0x1cf   : > { %s1128_s19 = smov %s994_s25  ;;  %s1129_s20 = smov %s986_s22 }
 0x1d0   :  { %14 = sbr.rel (!%p12_p2) target bundleno = 2 (0x2), region = 152 }

</bundles_post_ra>
